<compile_context>
chip_gen: v7x
topology: tpu7x:2x2x1
jax: 0.10.0
libtpu: 0.0.40
codegen_flags: <defaults>
</compile_context>

<pallas_src>
import functools

import jax
import jax.numpy as jnp
from jax.experimental import pallas as pl
from jax.experimental.pallas import tpu as pltpu


_SQRT_HALF = 0.7071067811865476  # 1/sqrt(2)


def _gelu_exact(x):
    # Matches torch.nn.GELU() (approximate='none').
    return 0.5 * x * (1.0 + jax.lax.erf(x * _SQRT_HALF))


def _mlp_resident_kernel(x_ref, w1_ref, b1_ref, w2_ref, b2_ref, o_ref, *,
                         tk, n_chunks):
    """Weights fully resident in VMEM; 1-D grid over row tiles.

    x_ref:  (tm, dim_p)    row tile of the flattened input
    w1_ref: (dim_p, mlp_p) full fc1 weight (pre-transposed), resident
    b1_ref: (1, mlp_p)     fc1 bias (f32), resident
    w2_ref: (mlp_p, dim_p) full fc2 weight (pre-transposed), resident
    b2_ref: (1, dim_p)     fc2 bias (f32), resident
    o_ref:  (tm, dim_p)    output tile
    """
    x = x_ref[...]
    # Fold fc2 bias into the accumulator init (once per row tile).
    acc = jnp.broadcast_to(b2_ref[...].astype(jnp.float32), o_ref.shape)
    # Static, unrolled loop over hidden-dim chunks: the scheduler overlaps
    # chunk c+1's fc1 matmul / erf (VPU/EUP) with chunk c's fc2 matmul (MXU).
    for c in range(n_chunks):
        lo = c * tk
        h = jnp.dot(x, w1_ref[:, lo:lo + tk],
                    preferred_element_type=jnp.float32)
        h = _gelu_exact(h + b1_ref[:, lo:lo + tk].astype(jnp.float32))
        acc = acc + jnp.dot(h.astype(w2_ref.dtype), w2_ref[lo:lo + tk, :],
                            preferred_element_type=jnp.float32)
    o_ref[...] = acc.astype(o_ref.dtype)


def _mlp_streamed_kernel(x_ref, w1_ref, b1_ref, w2_ref, b2_ref, o_ref,
                         *maybe_acc, n_sub):
    """Weight chunks streamed from HBM; grid = (row tiles, hidden chunks).

    If no scratch is passed, the output dtype is f32 and accumulation goes
    directly into the output block (which is resident across the k axis).
    """
    acc_ref = maybe_acc[0] if maybe_acc else o_ref
    k = pl.program_id(1)
    nk = pl.num_programs(1)

    @pl.when(k == 0)
    def _init():
        # Fold fc2 bias into the accumulator init (once per row tile).
        acc_ref[...] = jnp.broadcast_to(
            b2_ref[...].astype(jnp.float32), acc_ref.shape)

    x = x_ref[...]
    sub = w1_ref.shape[1] // n_sub
    # Sub-chunk split so sub-chunk s+1's fc1/erf overlaps sub-chunk s's fc2.
    for s in range(n_sub):
        lo = s * sub
        h = jnp.dot(x, w1_ref[:, lo:lo + sub],
                    preferred_element_type=jnp.float32)
        h = _gelu_exact(h + b1_ref[:, lo:lo + sub].astype(jnp.float32))
        acc_ref[...] += jnp.dot(h.astype(w2_ref.dtype), w2_ref[lo:lo + sub, :],
                                preferred_element_type=jnp.float32)

    if maybe_acc:  # separate f32 scratch -> cast into the output at the end
        @pl.when(k == nk - 1)
        def _finalize():
            o_ref[...] = acc_ref[...].astype(o_ref.dtype)


def _round_up(x, m):
    return ((x + m - 1) // m) * m


def _vmem_capacity_bytes():
    try:
        info = pltpu.get_tpu_info()
        return int(getattr(info, "vmem_capacity_bytes", 64 * 1024 * 1024))
    except Exception:  # conservative fallback (v7x-sized)
        return 64 * 1024 * 1024


@functools.partial(jax.jit,
                   static_argnames=("tm", "tk", "compute_dtype",
                                    "weights_resident"))
def mlp_block(x, w1, b1, w2, b2, *, tm=256, tk=512, compute_dtype=None,
              weights_resident=None):
    """Apply MLPBlock to x of shape [..., dim]; returns same shape/dtype.

    tm: row tile (256 works well on v5e/v6e/v7x).
    tk: hidden-dim (mlp_dim) chunk size (auto-shrunk if VMEM-constrained).
    compute_dtype: matmul-input dtype.  Default: bf16 for f32 inputs (f32
        accumulation either way); pass jnp.float32 for the exact f32 MXU path.
    weights_resident: force (True/False) the resident-weight fast path;
        None = auto based on VMEM capacity.
    """
    orig_shape = x.shape
    orig_dtype = x.dtype
    dim = orig_shape[-1]
    mlp_dim, dim_w = w1.shape
    assert dim_w == dim
    assert w2.shape == (dim, mlp_dim)
    assert b1.shape == (mlp_dim,) and b2.shape == (dim,)

    # bf16 is the default MXU input path for f32 inputs: ~3-6x faster matmuls
    # and half the weight/activation DMA bytes; accumulation stays f32.
    if compute_dtype is None:
        compute_dtype = jnp.bfloat16 if orig_dtype == jnp.float32 else orig_dtype
    x = x.astype(compute_dtype)
    w1 = w1.astype(compute_dtype)
    w2 = w2.astype(compute_dtype)
    b1 = b1.astype(jnp.float32)   # biases feed the f32 accumulators directly
    b2 = b2.astype(jnp.float32)
    out_dtype = orig_dtype

    x2d = x.reshape(-1, dim)
    M = x2d.shape[0]

    itemsize = jnp.dtype(compute_dtype).itemsize
    o_isz = jnp.dtype(out_dtype).itemsize
    sub_mult = {4: 8, 2: 16, 1: 32}.get(itemsize, 8)   # sublane multiple

    # ---- padded / tiled sizes (all static under jit) ----------------------
    dim_p = _round_up(dim, 128)                          # lane-dense width
    tk_eff = _round_up(min(tk, _round_up(mlp_dim, 128)), 128)
    mlp_p = _round_up(mlp_dim, tk_eff)
    tm_eff = _round_up(min(tm, _round_up(M, sub_mult)), sub_mult)
    m_p = _round_up(M, tm_eff)

    # ---- generation-aware VMEM budget --------------------------------------
    vmem_cap = _vmem_capacity_bytes()        # ~64 MiB v7x, ~128 MiB v5e/v6e
    vmem_budget = int(vmem_cap * 0.85)       # headroom for Mosaic scratch

    n_chunks = mlp_p // tk_eff
    # Resident-weight working set.  Constant index_map => each weight is
    # fetched from HBM exactly once, but Pallas still allocates the default
    # two buffers per input, hence the factor 2 on the weights.
    resident_bytes = (
        2 * 2 * dim_p * mlp_p * itemsize        # W1^T + W2^T (x2 buffers)
        + 2 * mlp_p * 4 + 2 * dim_p * 4         # b1, b2 (f32)
        + 2 * tm_eff * dim_p * itemsize         # x tiles (double buffered)
        + 2 * tm_eff * dim_p * o_isz            # out tiles
        + tm_eff * dim_p * 4                    # f32 accumulator
        + 2 * tm_eff * tk_eff * 4)              # fc1 / GELU intermediates
    if weights_resident is None:
        weights_resident = (resident_bytes <= int(vmem_cap * 0.7)
                            and n_chunks <= 32)

    if weights_resident:
        vmem_limit = resident_bytes + max(resident_bytes // 4, 4 * 1024 * 1024)
    else:
        # Streamed working set; shrink tk until it fits comfortably.
        def _streamed_bytes(tk_):
            return (2 * tm_eff * dim_p * itemsize        # x tiles
                    + 2 * dim_p * tk_ * itemsize         # W1^T chunks
                    + 2 * tk_ * 4                        # b1 chunks
                    + 2 * tk_ * dim_p * itemsize         # W2^T chunks
                    + 2 * dim_p * 4                      # b2
                    + 2 * tm_eff * dim_p * o_isz         # out tiles
                    + (0 if out_dtype == jnp.float32
                       else tm_eff * dim_p * 4)          # acc scratch
                    + 2 * tm_eff * tk_ * 4)              # fc1/GELU intermediates

        while _streamed_bytes(tk_eff) > int(vmem_cap * 0.6) and tk_eff > 128:
            tk_eff = max(128, _round_up(tk_eff // 2, 128))
        mlp_p = _round_up(mlp_dim, tk_eff)
        needed = _streamed_bytes(tk_eff)
        vmem_limit = needed + max(needed // 3, 4 * 1024 * 1024)
    vmem_limit = int(min(max(vmem_limit, 16 * 1024 * 1024), vmem_budget))

    # ---- zero-pad operands (exact: GELU(0)=0, padded weights are zero) ----
    x2d = jnp.pad(x2d, ((0, m_p - M), (0, dim_p - dim)))
    w1t = jnp.pad(w1.T, ((0, dim_p - dim), (0, mlp_p - mlp_dim)))   # (dim_p, mlp_p)
    b1r = jnp.pad(b1.reshape(1, mlp_dim), ((0, 0), (0, mlp_p - mlp_dim)))
    w2t = jnp.pad(w2.T, ((0, mlp_p - mlp_dim), (0, dim_p - dim)))   # (mlp_p, dim_p)
    b2r = jnp.pad(b2.reshape(1, dim), ((0, 0), (0, dim_p - dim)))

    # TODO(synk): for tiny M on v7x (2 TensorCores) add a second parallel axis
    # over dim_p columns so both cores get work when m_p // tm_eff == 1.

    if weights_resident:
        kernel = functools.partial(_mlp_resident_kernel,
                                   tk=tk_eff, n_chunks=n_chunks)
        out = pl.pallas_call(
            kernel,
            out_shape=jax.ShapeDtypeStruct((m_p, dim_p), out_dtype),
            grid_spec=pltpu.PrefetchScalarGridSpec(
                num_scalar_prefetch=0,
                grid=(m_p // tm_eff,),
                in_specs=[
                    pl.BlockSpec((tm_eff, dim_p), lambda i: (i, 0)),  # x tile
                    pl.BlockSpec((dim_p, mlp_p), lambda i: (0, 0)),   # W1^T resident
                    pl.BlockSpec((1, mlp_p), lambda i: (0, 0)),       # b1   resident
                    pl.BlockSpec((mlp_p, dim_p), lambda i: (0, 0)),   # W2^T resident
                    pl.BlockSpec((1, dim_p), lambda i: (0, 0)),       # b2   resident
                ],
                out_specs=pl.BlockSpec((tm_eff, dim_p), lambda i: (i, 0)),
            ),
            compiler_params=pltpu.CompilerParams(
                dimension_semantics=("parallel",),
                vmem_limit_bytes=vmem_limit,
            ),
        )(x2d, w1t, b1r, w2t, b2r)
    else:
        if tk_eff % 1024 == 0:
            n_sub = 4
        elif tk_eff % 512 == 0:
            n_sub = 2
        else:
            n_sub = 1
        use_scratch = out_dtype != jnp.float32
        scratch = ([pltpu.VMEM((tm_eff, dim_p), jnp.float32)]
                   if use_scratch else [])
        kernel = functools.partial(_mlp_streamed_kernel, n_sub=n_sub)
        out = pl.pallas_call(
            kernel,
            out_shape=jax.ShapeDtypeStruct((m_p, dim_p), out_dtype),
            grid_spec=pltpu.PrefetchScalarGridSpec(
                num_scalar_prefetch=0,
                grid=(m_p // tm_eff, mlp_p // tk_eff),
                in_specs=[
                    pl.BlockSpec((tm_eff, dim_p), lambda i, k: (i, 0)),  # x tile
                    pl.BlockSpec((dim_p, tk_eff), lambda i, k: (0, k)),  # W1^T chunk
                    pl.BlockSpec((1, tk_eff), lambda i, k: (0, k)),      # b1 chunk
                    pl.BlockSpec((tk_eff, dim_p), lambda i, k: (k, 0)),  # W2^T chunk
                    pl.BlockSpec((1, dim_p), lambda i, k: (0, 0)),       # b2
                ],
                out_specs=pl.BlockSpec((tm_eff, dim_p), lambda i, k: (i, 0)),
                scratch_shapes=scratch,
            ),
            compiler_params=pltpu.CompilerParams(
                dimension_semantics=("parallel", "arbitrary"),
                vmem_limit_bytes=vmem_limit,
            ),
        )(x2d, w1t, b1r, w2t, b2r)

    out = out[:M, :dim].reshape(orig_shape)
    return out.astype(orig_dtype)


def mlp_block_ref(x, w1, b1, w2, b2):
    """Pure-JAX reference (high-precision f32 matmuls, exact GELU)."""
    hp = jax.lax.Precision.HIGHEST
    h = jnp.dot(x, w1.T, precision=hp) + b1
    h = _gelu_exact(h)
    return jnp.dot(h, w2.T, precision=hp) + b2


def init_mlp_params(key, dim, mlp_dim=None, dtype=jnp.float32):
    """Deterministic init mimicking nn.Linear's default uniform init."""
    mlp_dim = dim if mlp_dim is None else mlp_dim
    k1, k2, k3, k4 = jax.random.split(key, 4)
    bound1 = 1.0 / jnp.sqrt(dim)
    bound2 = 1.0 / jnp.sqrt(mlp_dim)
    w1 = jax.random.uniform(k1, (mlp_dim, dim), dtype, -bound1, bound1)
    b1 = jax.random.uniform(k2, (mlp_dim,), dtype, -bound1, bound1)
    w2 = jax.random.uniform(k3, (dim, mlp_dim), dtype, -bound2, bound2)
    b2 = jax.random.uniform(k4, (dim,), dtype, -bound2, bound2)
    return w1, b1, w2, b2


if __name__ == "__main__":
    key = jax.random.PRNGKey(0)
    k1, k2, k3, k4, k5, k6 = jax.random.split(key, 6)

    # --- test 1: small Mixer-like shapes, default bf16 MXU path, resident
    #             weights ---------------------------------------------------
    samples, seq, dim, mlp_dim = 2, 8, 32, 64
    x = jax.random.normal(k1, (samples, seq, dim), dtype=jnp.float32)
    w1, b1, w2, b2 = init_mlp_params(k2, dim, mlp_dim)
    y = jax.block_until_ready(mlp_block(x, w1, b1, w2, b2))
    y_ref = mlp_block_ref(x, w1, b1, w2, b2)
    assert y.shape == x.shape and y.dtype == x.dtype
    assert jnp.allclose(y, y_ref, atol=3e-2, rtol=3e-2)

    # --- test 2: non-128-multiple dims, forced streamed path, exact f32
    #             matmul-input path, accumulate directly into f32 output ----
    samples2, seq2, dim2, mlp_dim2 = 2, 72, 160, 320   # M=144, 3 K chunks
    x2 = jax.random.normal(k3, (samples2, seq2, dim2), dtype=jnp.float32)
    w1b, b1b, w2b, b2b = init_mlp_params(k4, dim2, mlp_dim2)
    y2 = jax.block_until_ready(
        mlp_block(x2, w1b, b1b, w2b, b2b, tm=128, tk=128,
                  compute_dtype=jnp.float32, weights_resident=False))
    y2_ref = mlp_block_ref(x2, w1b, b1b, w2b, b2b)
    assert y2.shape == x2.shape
    assert jnp.allclose(y2, y2_ref, atol=1e-4, rtol=1e-4)

    # --- test 3: multi-row-tile + multi-chunk resident path (bf16 default) -
    samples3, seq3, dim3, mlp_dim3 = 4, 128, 256, 1024   # M=512, 2 chunks
    x3 = jax.random.normal(k5, (samples3, seq3, dim3), dtype=jnp.float32)
    w1c, b1c, w2c, b2c = init_mlp_params(k6, dim3, mlp_dim3)
    y3 = jax.block_until_ready(mlp_block(x3, w1c, b1c, w2c, b2c))
    y3_ref = mlp_block_ref(x3, w1c, b1c, w2c, b2c)
    assert y3.shape == x3.shape
    assert jnp.allclose(y3, y3_ref, atol=3e-2, rtol=3e-2)

    # --- test 4: bf16 inputs/outputs, forced streamed path with f32 acc
    #             scratch ---------------------------------------------------
    x4 = x2.astype(jnp.bfloat16)
    y4 = jax.block_until_ready(
        mlp_block(x4, w1b, b1b, w2b, b2b, weights_resident=False))
    assert y4.shape == x4.shape and y4.dtype == jnp.bfloat16
    assert jnp.allclose(y4.astype(jnp.float32), y2_ref, atol=4e-2, rtol=4e-2)

    print("KERNEL_OK")
</pallas_src>

<mosaic_0001>
module attributes {stable_mosaic.version = 11 : i64} {
  func.func @_mlp_resident_kernel(%arg0: i32, %arg1: memref<16x128xbf16, #tpu.memory_space<vmem>>, %arg2: memref<128x128xbf16, #tpu.memory_space<vmem>>, %arg3: memref<1x128xf32, #tpu.memory_space<vmem>>, %arg4: memref<128x128xbf16, #tpu.memory_space<vmem>>, %arg5: memref<1x128xf32, #tpu.memory_space<vmem>>, %arg6: memref<16x128xf32, #tpu.memory_space<vmem>>) attributes {dimension_semantics = [#tpu.dimension_semantics<parallel>], iteration_bounds = array<i64: 1>, scalar_prefetch = 0 : i64, scratch_operands = 0 : i64, tpu.core_type = #tpu.core_type<tc>, window_params = [{transform_indices = @transform_0, window_bounds = array<i64: 16, 128>}, {pipeline_mode = #tpu.pipeline_mode<synchronous>, transform_indices = @transform_1, window_bounds = array<i64: 128, 128>}, {pipeline_mode = #tpu.pipeline_mode<synchronous>, transform_indices = @transform_2, window_bounds = array<i64: 1, 128>}, {pipeline_mode = #tpu.pipeline_mode<synchronous>, transform_indices = @transform_3, window_bounds = array<i64: 128, 128>}, {pipeline_mode = #tpu.pipeline_mode<synchronous>, transform_indices = @transform_4, window_bounds = array<i64: 1, 128>}, {transform_indices = @transform_5, window_bounds = array<i64: 16, 128>}]} {
    %c0 = arith.constant 0 : index
    %c0_0 = arith.constant 0 : index
    %0 = vector.load %arg1[%c0, %c0_0] : memref<16x128xbf16, #tpu.memory_space<vmem>>, vector<16x128xbf16>
    %c0_1 = arith.constant 0 : index
    %c0_2 = arith.constant 0 : index
    %1 = vector.load %arg5[%c0_1, %c0_2] : memref<1x128xf32, #tpu.memory_space<vmem>>, vector<1x128xf32>
    %2 = vector.shape_cast %1 : vector<1x128xf32> to vector<1x128xf32>
    %3 = vector.broadcast %2 : vector<1x128xf32> to vector<16x128xf32>
    %c0_3 = arith.constant 0 : index
    %c0_4 = arith.constant 0 : index
    %4 = vector.load %arg2[%c0_3, %c0_4] : memref<128x128xbf16, #tpu.memory_space<vmem>>, vector<128x128xbf16>
    %cst = arith.constant dense<0.000000e+00> : vector<16x128xf32>
    %5 = tpu.matmul %0, %4, %cst {dimension_numbers = #tpu.dot_dimension_numbers<[1], [0], [0], [1], [0, 0, 1, 1], [], []>} : vector<16x128xbf16>, vector<128x128xbf16>, vector<16x128xf32> -> vector<16x128xf32>
    %c0_5 = arith.constant 0 : index
    %c0_6 = arith.constant 0 : index
    %6 = vector.load %arg3[%c0_5, %c0_6] : memref<1x128xf32, #tpu.memory_space<vmem>>, vector<1x128xf32>
    %7 = vector.broadcast %6 : vector<1x128xf32> to vector<16x128xf32>
    %8 = arith.addf %5, %7 : vector<16x128xf32>
    %cst_7 = arith.constant 5.000000e-01 : f32
    %9 = vector.broadcast %cst_7 : f32 to vector<16x128xf32>
    %10 = arith.mulf %9, %8 : vector<16x128xf32>
    %cst_8 = arith.constant 0.707106769 : f32
    %11 = vector.broadcast %cst_8 : f32 to vector<16x128xf32>
    %12 = arith.mulf %8, %11 : vector<16x128xf32>
    %13 = math.erf %12 : vector<16x128xf32>
    %cst_9 = arith.constant 1.000000e+00 : f32
    %14 = vector.broadcast %cst_9 : f32 to vector<16x128xf32>
    %15 = arith.addf %14, %13 : vector<16x128xf32>
    %16 = arith.mulf %10, %15 : vector<16x128xf32>
    %17 = arith.truncf %16 : vector<16x128xf32> to vector<16x128xbf16>
    %c0_10 = arith.constant 0 : index
    %c0_11 = arith.constant 0 : index
    %18 = vector.load %arg4[%c0_10, %c0_11] : memref<128x128xbf16, #tpu.memory_space<vmem>>, vector<128x128xbf16>
    %cst_12 = arith.constant dense<0.000000e+00> : vector<16x128xf32>
    %19 = tpu.matmul %17, %18, %cst_12 {dimension_numbers = #tpu.dot_dimension_numbers<[1], [0], [0], [1], [0, 0, 1, 1], [], []>} : vector<16x128xbf16>, vector<128x128xbf16>, vector<16x128xf32> -> vector<16x128xf32>
    %20 = arith.addf %3, %19 : vector<16x128xf32>
    %c0_13 = arith.constant 0 : index
    %c0_14 = arith.constant 0 : index
    %21 = vector.load %arg6[%c0_13, %c0_14] : memref<16x128xf32, #tpu.memory_space<vmem>>, vector<16x128xf32>
    tpu.vector_store %arg6[%c0_13, %c0_14], %20 {strides = array<i32>} : memref<16x128xf32, #tpu.memory_space<vmem>>, vector<16x128xf32>,
    return
  }
  func.func @transform_0(%arg0: i32) -> (i32, i32) {
    %c0_i32 = arith.constant 0 : i32
    %c0_i32_0 = arith.constant 0 : i32
    return %arg0, %c0_i32 : i32, i32
  }
  func.func @transform_1(%arg0: i32) -> (i32, i32) {
    %c0_i32 = arith.constant 0 : i32
    %c0_i32_0 = arith.constant 0 : i32
    %c0_i32_1 = arith.constant 0 : i32
    return %c0_i32, %c0_i32_0 : i32, i32
  }
  func.func @transform_2(%arg0: i32) -> (i32, i32) {
    %c0_i32 = arith.constant 0 : i32
    %c0_i32_0 = arith.constant 0 : i32
    %c0_i32_1 = arith.constant 0 : i32
    return %c0_i32, %c0_i32_0 : i32, i32
  }
  func.func @transform_3(%arg0: i32) -> (i32, i32) {
    %c0_i32 = arith.constant 0 : i32
    %c0_i32_0 = arith.constant 0 : i32
    %c0_i32_1 = arith.constant 0 : i32
    return %c0_i32, %c0_i32_0 : i32, i32
  }
  func.func @transform_4(%arg0: i32) -> (i32, i32) {
    %c0_i32 = arith.constant 0 : i32
    %c0_i32_0 = arith.constant 0 : i32
    %c0_i32_1 = arith.constant 0 : i32
    return %c0_i32, %c0_i32_0 : i32, i32
  }
  func.func @transform_5(%arg0: i32) -> (i32, i32) {
    %c0_i32 = arith.constant 0 : i32
    %c0_i32_0 = arith.constant 0 : i32
    return %arg0, %c0_i32 : i32, i32
  }
}

</mosaic_0001>

<bundles_post_ra>
// kernel: mlp_block.1
= control target key start
LH: loop header
LB: loop body
LE: loop exit
PB: predicated region body
PF: predicated region fallthrough
CT: control target
= control target key end

     0   :  { %v372_v0 = vmov 0.0   ;;  %vm373_vm0 = vmmov 0   ;;  %s467_s1 = inlined_call_operand.vmem [shape: bf16[128,128], index: 1, kind: input, shape index: {}]   ;;  %s468_s3 = inlined_call_operand.vmem [shape: bf16[128,128], index: 3, kind: input, shape index: {}]   ;;  %s469_s0 = inlined_call_operand.vmem [shape: bf16[16,128], index: 0, kind: input, shape index: {}]   ;;  %s470_s2 = inlined_call_operand.vmem [shape: f32[1,128], index: 2, kind: input, shape index: {}]   ;;  %s471_s4 = inlined_call_operand.vmem [shape: f32[1,128], index: 4, kind: input, shape index: {}]   ;;  %s472_s5 = inlined_call_operand.vmem [shape: f32[16,128], index: 5, kind: output, shape index: {}]  }
   0x1   :  { %309 = vmatprep.subr.bf16.mxu0 %v372_v0  ;;  %v351_v1 = vld [vmem:[%s467_s1] sm:$0xff]   ;;  %325 = vmatprep.mubr.msk.bf16.mxu0 %vm373_vm0, %v372_v0  ;;  %v352_v2 = vld [vmem:[%s467_s1 + $0x8] sm:$0xff]   ;;  %v353_v3 = vld [vmem:[%s467_s1 + $0x10] sm:$0xff]  }
   0x2   :  { %329 = vmatprep.subr.bf16.mxu1 %v372_v0  ;;  %345 = vmatprep.mubr.msk.bf16.mxu1 %vm373_vm0, %v372_v0  ;;  %v360_v4 = vld [vmem:[%s468_s3] sm:$0xff]   ;;  %v354_v5 = vld [vmem:[%s467_s1 + $0x18] sm:$0xff]   ;;  %v361_v6 = vld [vmem:[%s468_s3 + $0x8] sm:$0xff]  }
   0x3   :  { %310 = vmatpush3.bf16.msra.mxu0 %v351_v1  ;;  %330 = vmatpush3.bf16.msra.mxu1 %v360_v4  ;;  %v355_v7 = vld [vmem:[%s467_s1 + $0x20] sm:$0xff]   ;;  %v356_v8 = vld [vmem:[%s467_s1 + $0x28] sm:$0xff]   ;;  %v357_v9 = vld [vmem:[%s467_s1 + $0x30] sm:$0xff]  }
   0x4   :  { %311 = vmatprep.subr.bf16.mxu0 %v372_v0  ;;  %331 = vmatprep.subr.bf16.mxu1 %v372_v0  ;;  %v358_v10 = vld [vmem:[%s467_s1 + $0x38] sm:$0xff]   ;;  %v359_v11 = vld [vmem:[%s469_s0] sm:$0xff]   ;;  %v362_v12 = vld [vmem:[%s468_s3 + $0x10] sm:$0xff]  }
   0x5   :  { %v363_v13 = vld [vmem:[%s468_s3 + $0x18] sm:$0xff]   ;;  %v364_v14 = vld [vmem:[%s468_s3 + $0x20] sm:$0xff]   ;;  %v365_v15 = vld [vmem:[%s468_s3 + $0x28] sm:$0xff]  }
   0x6   :  { %v366_v16 = vld [vmem:[%s468_s3 + $0x30] sm:$0xff]   ;;  %v367_v17 = vld [vmem:[%s468_s3 + $0x38] sm:$0xff]   ;;  %v273_v18 = vld [vmem:[%s470_s2] ss:$0 sm:$0xff] }
   0x7   :  { %312 = vmatpush3.bf16.msra.mxu0 %v352_v2  ;;  %332 = vmatpush3.bf16.msra.mxu1 %v361_v6  ;;  %v272_v36 = vld [vmem:[%s471_s4] ss:$0 sm:$0xff] }
   0x8   :  { %313 = vmatprep.subr.bf16.mxu0 %v372_v0  ;;  %333 = vmatprep.subr.bf16.mxu1 %v372_v0 }
   0xb   :  { %314 = vmatpush3.bf16.msra.mxu0 %v353_v3  ;;  %334 = vmatpush3.bf16.msra.mxu1 %v362_v12 }
   0xc   :  { %315 = vmatprep.subr.bf16.mxu0 %v372_v0  ;;  %335 = vmatprep.subr.bf16.mxu1 %v372_v0 }
   0xf   :  { %316 = vmatpush3.bf16.msra.mxu0 %v354_v5  ;;  %336 = vmatpush3.bf16.msra.mxu1 %v363_v13 }
  0x10   :  { %317 = vmatprep.subr.bf16.mxu0 %v372_v0  ;;  %337 = vmatprep.subr.bf16.mxu1 %v372_v0 }
  0x13   :  { %318 = vmatpush3.bf16.msra.mxu0 %v355_v7  ;;  %338 = vmatpush3.bf16.msra.mxu1 %v364_v14 }
  0x14   :  { %319 = vmatprep.subr.bf16.mxu0 %v372_v0  ;;  %339 = vmatprep.subr.bf16.mxu1 %v372_v0 }
  0x17   :  { %320 = vmatpush3.bf16.msra.mxu0 %v356_v8  ;;  %340 = vmatpush3.bf16.msra.mxu1 %v365_v15 }
  0x18   :  { %321 = vmatprep.subr.bf16.mxu0 %v372_v0  ;;  %341 = vmatprep.subr.bf16.mxu1 %v372_v0 }
  0x1b   :  { %322 = vmatpush3.bf16.msra.mxu0 %v357_v9  ;;  %342 = vmatpush3.bf16.msra.mxu1 %v366_v16 }
  0x1c   :  { %323 = vmatprep.subr.bf16.mxu0 %v372_v0  ;;  %343 = vmatprep.subr.bf16.mxu1 %v372_v0 }
  0x1f   :  { %324 = vmatpush3.bf16.msra.mxu0 %v358_v10  ;;  %344 = vmatpush3.bf16.msra.mxu1 %v367_v17 }
  0x22   :  { %326 = vmatmul.mubr.bf16.vlgmr.msra.gmra.mrb[0].mxu0 %v359_v11 }
  0xf5   :  { %v141_v19 = vpop.f32.mrb[0].mxu0 }
  0xf6   :  { %v142_v20 = vadd.f32 %v273_v18, %v141_v19  ;;  %v327_v21 = vpop.f32.mrb[1].mxu0 }
  0xf7   :  { %v144_v22 = vpop.f32.mrb[2].mxu0 }
  0xf8   :  { %v150_v23 = vmul.f32 0.70710677, %v142_v20  ;;  %v145_v24 = vadd.f32 %v273_v18, %v144_v22  ;;  %v328_v25 = vpop.f32.mrb[3].mxu0  ;;  %v148_v30 = vmul.f32 0.5, %v142_v20 }
  0xfa   :  { %368 = verf.f32 %v150_v23  ;;  %v151_v26 = vmul.f32 0.70710677, %v145_v24  ;;  %v149_v31 = vmul.f32 0.5, %v145_v24 }
  0xfc   :  { %370 = verf.f32 %v151_v26 }
 0x104   :  { %v369_v27 = vpop.eup %368 }
 0x105   :  { %v154_v28 = vadd.f32 1.0, %v369_v27 }
 0x106   :  { %v371_v29 = vpop.eup %370 }
 0x107   :  { %v155_v32 = vadd.f32 1.0, %v371_v29  ;;  %v156_v33 = vmul.f32 %v154_v28, %v148_v30 }
 0x109   :  { %v157_v34 = vmul.f32 %v155_v32, %v149_v31 }
 0x10b   :  { %v158_v35 = vpack.c.bf16 %v157_v34, %v156_v33 }
 0x10d   :  { %346 = vmatmul.mubr.bf16.vlgmr.msra.gmra.mrb[0].mxu1 %v158_v35 }
 0x1e0   :  { %v257_v37 = vpop.f32.mrb[0].mxu1 }
 0x1e1   :  { %v264_v38 = vadd.f32 %v272_v36, %v257_v37  ;;  %v347_v39 = vpop.f32.mrb[1].mxu1 }
 0x1e2   :  { %v260_v40 = vpop.f32.mrb[2].mxu1 }
 0x1e3   :  { %266 = vst [vmem:[%s472_s5] sm:$0xff] %v264_v38  ;;  %v265_v41 = vadd.f32 %v272_v36, %v260_v40  ;;  %v348_v42 = vpop.f32.mrb[3].mxu1 }
 0x1e5   :  { %267 = vst [vmem:[%s472_s5 + $0x8] sm:$0xff] %v265_v41 }

</bundles_post_ra>
